<compile_context>
chip_gen: v5e
topology: v5e:2x2
jax: 0.10.0
libtpu: 0.0.40
codegen_flags: <defaults>
</compile_context>

<pallas_src>
import math

import jax
import jax.numpy as jnp
from jax.experimental import pallas as pl
from jax.experimental.pallas import tpu as pltpu


# ----------------------------------------------------------------------------
# Hyperparameters (mirrors hparams consumed by load_hparams)
# ----------------------------------------------------------------------------
HPARAMS = dict(
    input_normalizing_constant=2.0,
    n_cg_blocks=2,
    do_initial_linear_projection=True,
    ch_initial_linear_projection=8,
    lmax_list=[1, 1],
    ch_size_list=[8, 8],
    ls_nonlin_rule_list=["full", "full"],
    ch_nonlin_rule_list=["elementwise", "elementwise"],
    use_additive_skip_connections=True,
    weights_initializer="glorot",
    use_batch_norm=False,
    norm_type="signal",
    normalization="component",
    norm_balanced=False,
    norm_affine=True,
    norm_nonlinearity=None,
    norm_location="post",
    linearity_first=True,
    filter_symmetric=True,
    output_dim=4,
    conditioning_dim=8,
    conditioning_hidden_dim=8,
)
NORMALIZE_INPUT_AT_RUNTIME = True

_INV_SQRT3 = 1.0 / math.sqrt(3.0)   # Wigner-3j (1,1,0) / (0,1,1) coefficient


# ----------------------------------------------------------------------------
# Fused Pallas kernel
# ----------------------------------------------------------------------------
def _vmem():
    return pl.BlockSpec(memory_space=pltpu.MemorySpace.VMEM)


def _match_channels(h, c_out):
    """Reproduces the torch channel slice / F.pad used by the skip connection.
    h: (rows, C_in) internal layout, channels on the last (lane) axis."""
    c_in = h.shape[-1]
    if c_in == c_out:
        return h
    if c_in > c_out:
        return h[:, :c_out]
    pad = jnp.zeros((h.shape[0], c_out - c_in), h.dtype)
    return jnp.concatenate([h, pad], axis=-1)


def make_fused_kernel(n_blocks, do_initial, use_skip, inv_norm):
    """Single fused kernel: everything stays in VMEM / vregs.

    Ref order:
      x0 (B, C0), x1 (3B, C1), c (B, Dc),
      Wc (Dc, H), bc (1, H), Wi0 (C0+H, Ci), Wi1 (C1, Ci),
      [W0, W1, a0, a1] * n_blocks,
      Wv (Cprev, Dout),
      out (3B, Dout)
    """

    def kernel(*refs):
        x0_ref, x1_ref, c_ref, wc_ref, bc_ref, wi0_ref, wi1_ref = refs[:7]
        blk = refs[7:7 + 4 * n_blocks]
        wv_ref = refs[7 + 4 * n_blocks]
        out_ref = refs[8 + 4 * n_blocks]

        B = x0_ref.shape[0]

        # --- runtime input normalization ---
        x0 = x0_ref[...] * inv_norm                      # (B, C0)
        x1 = x1_ref[...] * inv_norm                      # (3B, C1), m-major

        # --- conditioning Linear + concat onto l=0 channels ---
        proj = (jnp.dot(c_ref[...], wc_ref[...], preferred_element_type=jnp.float32)
                + bc_ref[...])                            # (B, H)
        h0 = jnp.concatenate([x0, proj], axis=-1)         # (B, C0 + H)

        # --- initial SO3 linear projection (per-degree channel mixing) ---
        if do_initial:
            h0 = jnp.dot(h0, wi0_ref[...], preferred_element_type=jnp.float32)
            h1 = jnp.dot(x1, wi1_ref[...], preferred_element_type=jnp.float32)
        else:
            h1 = x1

        # --- CG blocks (linearity_first -> CG nonlinearity -> signal norm) ---
        for i in range(n_blocks):
            w0 = blk[4 * i][...]
            w1 = blk[4 * i + 1][...]
            a0 = blk[4 * i + 2][...]                      # (1, C)
            a1 = blk[4 * i + 3][...]                      # (1, C)
            c_out = w0.shape[-1]

            # SO3 linearity: one flattened matmul per degree (single MXU push).
            t0h = jnp.dot(h0, w0, preferred_element_type=jnp.float32)     # (B, C)
            t1h = jnp.dot(h1, w1, preferred_element_type=jnp.float32)     # (3B, C)

            m0 = t1h[0 * B:1 * B, :]
            m1 = t1h[1 * B:2 * B, :]
            m2 = t1h[2 * B:3 * B, :]
            n1sq = m0 * m0 + m1 * m1 + m2 * m2                             # (B, C)

            # CG tensor product, elementwise channel rule:
            #   (0,0)->0 : w3j = 1 ;  (1,1)->0 : delta_{m1 m2}/sqrt(3)
            #   (0,1)->1 : delta_{m2 m3}/sqrt(3)
            #   (1,1)->1 antisymmetric term of a feature with itself == 0
            t0 = t0h * t0h + _INV_SQRT3 * n1sq                             # (B, C)
            t1_0 = _INV_SQRT3 * t0h * m0
            t1_1 = _INV_SQRT3 * t0h * m1
            t1_2 = _INV_SQRT3 * t0h * m2

            # signal norm ('component') pooled over the 4 components + affine
            # TODO(synk): exact nn.signal_norm may normalize per degree; pooled
            # variant kept from the reference implementation of this kernel.
            sq = t0 * t0 + t1_0 * t1_0 + t1_1 * t1_1 + t1_2 * t1_2
            inv = jax.lax.rsqrt(sq * 0.25 + 1e-6)                          # (B, C)

            y0 = a0 * t0 * inv                                             # (B, C)
            s1 = a1 * inv                                                  # (B, C)
            y1 = jnp.concatenate([t1_0 * s1, t1_1 * s1, t1_2 * s1], axis=0)  # (3B, C)

            if use_skip:
                y0 = y0 + _match_channels(h0, c_out)
                y1 = y1 + _match_channels(h1, c_out)

            h0, h1 = y0, y1

        # --- vector predictor on the l=1 features only (single full store) ---
        out_ref[...] = jnp.dot(h1, wv_ref[...], preferred_element_type=jnp.float32)

    return kernel


# ----------------------------------------------------------------------------
# Parameters (deterministic synthetic init — no checkpoint load)
# ----------------------------------------------------------------------------
def _glorot(key, fan_in, fan_out):
    scale = math.sqrt(2.0 / (fan_in + fan_out))
    return scale * jax.random.normal(key, (fan_in, fan_out), jnp.float32)


def init_params(key, c0_in, c1_in):
    hp = HPARAMS
    n_blk = hp["n_cg_blocks"]
    ks = list(jax.random.split(key, 4 + 2 * n_blk))

    params = {}
    # conditioning_projection: Linear(conditioning_dim, conditioning_hidden_dim)
    params["Wc"] = _glorot(ks[0], hp["conditioning_dim"], hp["conditioning_hidden_dim"])
    params["bc"] = jnp.zeros((1, hp["conditioning_hidden_dim"]), jnp.float32)

    c0_cond = c0_in + hp["conditioning_hidden_dim"]
    ch_init = hp["ch_initial_linear_projection"]
    params["Wi0"] = _glorot(ks[1], c0_cond, ch_init)
    params["Wi1"] = _glorot(ks[2], c1_in, ch_init)

    if hp["do_initial_linear_projection"]:
        prev_c0, prev_c1 = ch_init, ch_init
    else:
        prev_c0, prev_c1 = c0_cond, c1_in

    blocks = []
    for i in range(n_blk):
        ch = hp["ch_size_list"][i]
        blocks.append(dict(
            W0=_glorot(ks[3 + 2 * i], prev_c0, ch),
            W1=_glorot(ks[4 + 2 * i], prev_c1, ch),
            a0=jnp.ones((1, ch), jnp.float32),   # norm_affine per-channel scale
            a1=jnp.ones((1, ch), jnp.float32),
        ))
        prev_c0, prev_c1 = ch, ch
    params["blocks"] = blocks

    # vector_predictor: SO3_linearity(prev_c x 1e -> output_dim x 1e)
    params["Wv"] = _glorot(ks[3 + 2 * n_blk], prev_c1, hp["output_dim"])
    return params


# ----------------------------------------------------------------------------
# Forward pass (single fused pallas_call + boundary layout glue)
# ----------------------------------------------------------------------------
def forward(params, x, c):
    hp = HPARAMS
    x0, x1 = x[0], x[1]                       # PyTorch layout: (B, C_l, 2l+1)
    B = x0.shape[0]
    c1_in = x1.shape[1]
    dout = hp["output_dim"]

    # boundary layout glue -> kernel-internal layout
    x0_in = x0[:, :, 0]                                              # (B, C0)
    x1_in = jnp.transpose(x1, (2, 0, 1)).reshape(3 * B, c1_in)       # (3B, C1) m-major

    inv_norm = (1.0 / hp["input_normalizing_constant"]
                if (NORMALIZE_INPUT_AT_RUNTIME
                    and hp["input_normalizing_constant"] is not None) else 1.0)

    args = [x0_in, x1_in, c,
            params["Wc"], params["bc"], params["Wi0"], params["Wi1"]]
    for blk in params["blocks"]:
        args += [blk["W0"], blk["W1"], blk["a0"], blk["a1"]]
    args.append(params["Wv"])

    kernel = make_fused_kernel(
        n_blocks=len(params["blocks"]),
        do_initial=hp["do_initial_linear_projection"],
        use_skip=hp["use_additive_skip_connections"],
        inv_norm=inv_norm,
    )

    # Single fused kernel, everything resident in VMEM (activations are a few KiB).
    # No grid: at these sizes the whole batch fits in one vreg tile; if the batch
    # ever grows, tile it over a grid axis marked "parallel" (v7x dual-TC).
    out_flat = pl.pallas_call(
        kernel,
        out_shape=jax.ShapeDtypeStruct((3 * B, dout), jnp.float32),
        in_specs=[_vmem()] * len(args),
        out_specs=_vmem(),
    )(*args)

    # (3B, Dout) m-major -> PyTorch output layout (B, output_dim, 3)
    return jnp.transpose(out_flat.reshape(3, B, dout), (1, 2, 0))


# TODO(synk): the library modules `nn.SO3_linearity` / `nn.CGBlock` (exact w3j
# normalization/sign conventions, norm_nonlinearity, batch-norm stats) are
# external; the structure above follows their documented behavior with a
# signal-norm variant and an elementwise-channel CG rule.


# ----------------------------------------------------------------------------
if __name__ == "__main__":
    key = jax.random.PRNGKey(0)
    k_params, k0, k1, kc = jax.random.split(key, 4)

    B, C0_IN, C1_IN = 2, 4, 4   # irreps_in = 4x0e + 4x1e
    params = init_params(k_params, C0_IN, C1_IN)

    x = {
        0: jax.random.normal(k0, (B, C0_IN, 1), jnp.float32),
        1: jax.random.normal(k1, (B, C1_IN, 3), jnp.float32),
    }
    c = jax.random.normal(kc, (B, HPARAMS["conditioning_dim"]), jnp.float32)

    fwd = jax.jit(forward)
    out = fwd(params, x, c)
    out = jax.block_until_ready(out)

    assert out.shape == (B, HPARAMS["output_dim"], 3), out.shape
    assert bool(jnp.all(jnp.isfinite(out)))
    print("KERNEL_OK")
</pallas_src>

<mosaic_0001>
module attributes {stable_mosaic.version = 11 : i64} {
  func.func @kernel(%arg0: memref<2x4xf32, #tpu.memory_space<vmem>>, %arg1: memref<6x4xf32, #tpu.memory_space<vmem>>, %arg2: memref<2x8xf32, #tpu.memory_space<vmem>>, %arg3: memref<8x8xf32, #tpu.memory_space<vmem>>, %arg4: memref<1x8xf32, #tpu.memory_space<vmem>>, %arg5: memref<12x8xf32, #tpu.memory_space<vmem>>, %arg6: memref<4x8xf32, #tpu.memory_space<vmem>>, %arg7: memref<8x8xf32, #tpu.memory_space<vmem>>, %arg8: memref<8x8xf32, #tpu.memory_space<vmem>>, %arg9: memref<1x8xf32, #tpu.memory_space<vmem>>, %arg10: memref<1x8xf32, #tpu.memory_space<vmem>>, %arg11: memref<8x8xf32, #tpu.memory_space<vmem>>, %arg12: memref<8x8xf32, #tpu.memory_space<vmem>>, %arg13: memref<1x8xf32, #tpu.memory_space<vmem>>, %arg14: memref<1x8xf32, #tpu.memory_space<vmem>>, %arg15: memref<8x4xf32, #tpu.memory_space<vmem>>, %arg16: memref<6x4xf32, #tpu.memory_space<vmem>>) attributes {dimension_semantics = [], scalar_prefetch = 0 : i64, scratch_operands = 0 : i64, tpu.core_type = #tpu.core_type<tc>} {
    %c0 = arith.constant 0 : index
    %c0_0 = arith.constant 0 : index
    %0 = vector.load %arg0[%c0, %c0_0] : memref<2x4xf32, #tpu.memory_space<vmem>>, vector<2x4xf32>
    %cst = arith.constant 5.000000e-01 : f32
    %1 = vector.broadcast %cst : f32 to vector<2x4xf32>
    %2 = arith.mulf %0, %1 : vector<2x4xf32>
    %c0_1 = arith.constant 0 : index
    %c0_2 = arith.constant 0 : index
    %3 = vector.load %arg1[%c0_1, %c0_2] : memref<6x4xf32, #tpu.memory_space<vmem>>, vector<6x4xf32>
    %cst_3 = arith.constant 5.000000e-01 : f32
    %4 = vector.broadcast %cst_3 : f32 to vector<6x4xf32>
    %5 = arith.mulf %3, %4 : vector<6x4xf32>
    %c0_4 = arith.constant 0 : index
    %c0_5 = arith.constant 0 : index
    %6 = vector.load %arg2[%c0_4, %c0_5] : memref<2x8xf32, #tpu.memory_space<vmem>>, vector<2x8xf32>
    %c0_6 = arith.constant 0 : index
    %c0_7 = arith.constant 0 : index
    %7 = vector.load %arg3[%c0_6, %c0_7] : memref<8x8xf32, #tpu.memory_space<vmem>>, vector<8x8xf32>
    %cst_8 = arith.constant dense<0.000000e+00> : vector<2x8xf32>
    %8 = tpu.matmul %6, %7, %cst_8 {dimension_numbers = #tpu.dot_dimension_numbers<[1], [0], [0], [1], [0, 0, 1, 1], [], []>} : vector<2x8xf32>, vector<8x8xf32>, vector<2x8xf32> -> vector<2x8xf32>
    %c0_9 = arith.constant 0 : index
    %c0_10 = arith.constant 0 : index
    %9 = vector.load %arg4[%c0_9, %c0_10] : memref<1x8xf32, #tpu.memory_space<vmem>>, vector<1x8xf32>
    %10 = vector.broadcast %9 : vector<1x8xf32> to vector<2x8xf32>
    %11 = arith.addf %8, %10 : vector<2x8xf32>
    %12 = tpu.concatenate %2, %11 in 1 : vector<2x4xf32>, vector<2x8xf32> -> vector<2x12xf32>
    %c0_11 = arith.constant 0 : index
    %c0_12 = arith.constant 0 : index
    %13 = vector.load %arg5[%c0_11, %c0_12] : memref<12x8xf32, #tpu.memory_space<vmem>>, vector<12x8xf32>
    %cst_13 = arith.constant dense<0.000000e+00> : vector<2x8xf32>
    %14 = tpu.matmul %12, %13, %cst_13 {dimension_numbers = #tpu.dot_dimension_numbers<[1], [0], [0], [1], [0, 0, 1, 1], [], []>} : vector<2x12xf32>, vector<12x8xf32>, vector<2x8xf32> -> vector<2x8xf32>
    %c0_14 = arith.constant 0 : index
    %c0_15 = arith.constant 0 : index
    %15 = vector.load %arg6[%c0_14, %c0_15] : memref<4x8xf32, #tpu.memory_space<vmem>>, vector<4x8xf32>
    %cst_16 = arith.constant dense<0.000000e+00> : vector<6x8xf32>
    %16 = tpu.matmul %5, %15, %cst_16 {dimension_numbers = #tpu.dot_dimension_numbers<[1], [0], [0], [1], [0, 0, 1, 1], [], []>} : vector<6x4xf32>, vector<4x8xf32>, vector<6x8xf32> -> vector<6x8xf32>
    %c0_17 = arith.constant 0 : index
    %c0_18 = arith.constant 0 : index
    %17 = vector.load %arg7[%c0_17, %c0_18] : memref<8x8xf32, #tpu.memory_space<vmem>>, vector<8x8xf32>
    %c0_19 = arith.constant 0 : index
    %c0_20 = arith.constant 0 : index
    %18 = vector.load %arg8[%c0_19, %c0_20] : memref<8x8xf32, #tpu.memory_space<vmem>>, vector<8x8xf32>
    %c0_21 = arith.constant 0 : index
    %c0_22 = arith.constant 0 : index
    %19 = vector.load %arg9[%c0_21, %c0_22] : memref<1x8xf32, #tpu.memory_space<vmem>>, vector<1x8xf32>
    %c0_23 = arith.constant 0 : index
    %c0_24 = arith.constant 0 : index
    %20 = vector.load %arg10[%c0_23, %c0_24] : memref<1x8xf32, #tpu.memory_space<vmem>>, vector<1x8xf32>
    %cst_25 = arith.constant dense<0.000000e+00> : vector<2x8xf32>
    %21 = tpu.matmul %14, %17, %cst_25 {dimension_numbers = #tpu.dot_dimension_numbers<[1], [0], [0], [1], [0, 0, 1, 1], [], []>} : vector<2x8xf32>, vector<8x8xf32>, vector<2x8xf32> -> vector<2x8xf32>
    %cst_26 = arith.constant dense<0.000000e+00> : vector<6x8xf32>
    %22 = tpu.matmul %16, %18, %cst_26 {dimension_numbers = #tpu.dot_dimension_numbers<[1], [0], [0], [1], [0, 0, 1, 1], [], []>} : vector<6x8xf32>, vector<8x8xf32>, vector<6x8xf32> -> vector<6x8xf32>
    %23 = vector.extract_strided_slice %22 {offsets = [0, 0], sizes = [2, 8], strides = [1, 1]} : vector<6x8xf32> to vector<2x8xf32>
    %24 = vector.extract_strided_slice %22 {offsets = [2, 0], sizes = [2, 8], strides = [1, 1]} : vector<6x8xf32> to vector<2x8xf32>
    %25 = vector.extract_strided_slice %22 {offsets = [4, 0], sizes = [2, 8], strides = [1, 1]} : vector<6x8xf32> to vector<2x8xf32>
    %26 = arith.mulf %23, %23 : vector<2x8xf32>
    %27 = arith.mulf %24, %24 : vector<2x8xf32>
    %28 = arith.addf %26, %27 : vector<2x8xf32>
    %29 = arith.mulf %25, %25 : vector<2x8xf32>
    %30 = arith.addf %28, %29 : vector<2x8xf32>
    %31 = arith.mulf %21, %21 : vector<2x8xf32>
    %cst_27 = arith.constant 0.577350259 : f32
    %32 = vector.broadcast %cst_27 : f32 to vector<2x8xf32>
    %33 = arith.mulf %32, %30 : vector<2x8xf32>
    %34 = arith.addf %31, %33 : vector<2x8xf32>
    %cst_28 = arith.constant 0.577350259 : f32
    %35 = vector.broadcast %cst_28 : f32 to vector<2x8xf32>
    %36 = arith.mulf %35, %21 : vector<2x8xf32>
    %37 = arith.mulf %36, %23 : vector<2x8xf32>
    %cst_29 = arith.constant 0.577350259 : f32
    %38 = vector.broadcast %cst_29 : f32 to vector<2x8xf32>
    %39 = arith.mulf %38, %21 : vector<2x8xf32>
    %40 = arith.mulf %39, %24 : vector<2x8xf32>
    %cst_30 = arith.constant 0.577350259 : f32
    %41 = vector.broadcast %cst_30 : f32 to vector<2x8xf32>
    %42 = arith.mulf %41, %21 : vector<2x8xf32>
    %43 = arith.mulf %42, %25 : vector<2x8xf32>
    %44 = arith.mulf %34, %34 : vector<2x8xf32>
    %45 = arith.mulf %37, %37 : vector<2x8xf32>
    %46 = arith.addf %44, %45 : vector<2x8xf32>
    %47 = arith.mulf %40, %40 : vector<2x8xf32>
    %48 = arith.addf %46, %47 : vector<2x8xf32>
    %49 = arith.mulf %43, %43 : vector<2x8xf32>
    %50 = arith.addf %48, %49 : vector<2x8xf32>
    %cst_31 = arith.constant 2.500000e-01 : f32
    %51 = vector.broadcast %cst_31 : f32 to vector<2x8xf32>
    %52 = arith.mulf %50, %51 : vector<2x8xf32>
    %cst_32 = arith.constant 9.99999997E-7 : f32
    %53 = vector.broadcast %cst_32 : f32 to vector<2x8xf32>
    %54 = arith.addf %52, %53 : vector<2x8xf32>
    %55 = math.rsqrt %54 : vector<2x8xf32>
    %56 = vector.broadcast %19 : vector<1x8xf32> to vector<2x8xf32>
    %57 = arith.mulf %56, %34 : vector<2x8xf32>
    %58 = arith.mulf %57, %55 : vector<2x8xf32>
    %59 = vector.broadcast %20 : vector<1x8xf32> to vector<2x8xf32>
    %60 = arith.mulf %59, %55 : vector<2x8xf32>
    %61 = arith.mulf %37, %60 : vector<2x8xf32>
    %62 = arith.mulf %40, %60 : vector<2x8xf32>
    %63 = arith.mulf %43, %60 : vector<2x8xf32>
    %64 = tpu.concatenate %61, %62, %63 in 0 : vector<2x8xf32>, vector<2x8xf32>, vector<2x8xf32> -> vector<6x8xf32>
    %65 = arith.addf %58, %14 : vector<2x8xf32>
    %66 = arith.addf %64, %16 : vector<6x8xf32>
    %c0_33 = arith.constant 0 : index
    %c0_34 = arith.constant 0 : index
    %67 = vector.load %arg11[%c0_33, %c0_34] : memref<8x8xf32, #tpu.memory_space<vmem>>, vector<8x8xf32>
    %c0_35 = arith.constant 0 : index
    %c0_36 = arith.constant 0 : index
    %68 = vector.load %arg12[%c0_35, %c0_36] : memref<8x8xf32, #tpu.memory_space<vmem>>, vector<8x8xf32>
    %c0_37 = arith.constant 0 : index
    %c0_38 = arith.constant 0 : index
    %69 = vector.load %arg14[%c0_37, %c0_38] : memref<1x8xf32, #tpu.memory_space<vmem>>, vector<1x8xf32>
    %cst_39 = arith.constant dense<0.000000e+00> : vector<2x8xf32>
    %70 = tpu.matmul %65, %67, %cst_39 {dimension_numbers = #tpu.dot_dimension_numbers<[1], [0], [0], [1], [0, 0, 1, 1], [], []>} : vector<2x8xf32>, vector<8x8xf32>, vector<2x8xf32> -> vector<2x8xf32>
    %cst_40 = arith.constant dense<0.000000e+00> : vector<6x8xf32>
    %71 = tpu.matmul %66, %68, %cst_40 {dimension_numbers = #tpu.dot_dimension_numbers<[1], [0], [0], [1], [0, 0, 1, 1], [], []>} : vector<6x8xf32>, vector<8x8xf32>, vector<6x8xf32> -> vector<6x8xf32>
    %72 = vector.extract_strided_slice %71 {offsets = [0, 0], sizes = [2, 8], strides = [1, 1]} : vector<6x8xf32> to vector<2x8xf32>
    %73 = vector.extract_strided_slice %71 {offsets = [2, 0], sizes = [2, 8], strides = [1, 1]} : vector<6x8xf32> to vector<2x8xf32>
    %74 = vector.extract_strided_slice %71 {offsets = [4, 0], sizes = [2, 8], strides = [1, 1]} : vector<6x8xf32> to vector<2x8xf32>
    %75 = arith.mulf %72, %72 : vector<2x8xf32>
    %76 = arith.mulf %73, %73 : vector<2x8xf32>
    %77 = arith.addf %75, %76 : vector<2x8xf32>
    %78 = arith.mulf %74, %74 : vector<2x8xf32>
    %79 = arith.addf %77, %78 : vector<2x8xf32>
    %80 = arith.mulf %70, %70 : vector<2x8xf32>
    %cst_41 = arith.constant 0.577350259 : f32
    %81 = vector.broadcast %cst_41 : f32 to vector<2x8xf32>
    %82 = arith.mulf %81, %79 : vector<2x8xf32>
    %83 = arith.addf %80, %82 : vector<2x8xf32>
    %cst_42 = arith.constant 0.577350259 : f32
    %84 = vector.broadcast %cst_42 : f32 to vector<2x8xf32>
    %85 = arith.mulf %84, %70 : vector<2x8xf32>
    %86 = arith.mulf %85, %72 : vector<2x8xf32>
    %cst_43 = arith.constant 0.577350259 : f32
    %87 = vector.broadcast %cst_43 : f32 to vector<2x8xf32>
    %88 = arith.mulf %87, %70 : vector<2x8xf32>
    %89 = arith.mulf %88, %73 : vector<2x8xf32>
    %cst_44 = arith.constant 0.577350259 : f32
    %90 = vector.broadcast %cst_44 : f32 to vector<2x8xf32>
    %91 = arith.mulf %90, %70 : vector<2x8xf32>
    %92 = arith.mulf %91, %74 : vector<2x8xf32>
    %93 = arith.mulf %83, %83 : vector<2x8xf32>
    %94 = arith.mulf %86, %86 : vector<2x8xf32>
    %95 = arith.addf %93, %94 : vector<2x8xf32>
    %96 = arith.mulf %89, %89 : vector<2x8xf32>
    %97 = arith.addf %95, %96 : vector<2x8xf32>
    %98 = arith.mulf %92, %92 : vector<2x8xf32>
    %99 = arith.addf %97, %98 : vector<2x8xf32>
    %cst_45 = arith.constant 2.500000e-01 : f32
    %100 = vector.broadcast %cst_45 : f32 to vector<2x8xf32>
    %101 = arith.mulf %99, %100 : vector<2x8xf32>
    %cst_46 = arith.constant 9.99999997E-7 : f32
    %102 = vector.broadcast %cst_46 : f32 to vector<2x8xf32>
    %103 = arith.addf %101, %102 : vector<2x8xf32>
    %104 = math.rsqrt %103 : vector<2x8xf32>
    %105 = vector.broadcast %69 : vector<1x8xf32> to vector<2x8xf32>
    %106 = arith.mulf %105, %104 : vector<2x8xf32>
    %107 = arith.mulf %86, %106 : vector<2x8xf32>
    %108 = arith.mulf %89, %106 : vector<2x8xf32>
    %109 = arith.mulf %92, %106 : vector<2x8xf32>
    %110 = tpu.concatenate %107, %108, %109 in 0 : vector<2x8xf32>, vector<2x8xf32>, vector<2x8xf32> -> vector<6x8xf32>
    %111 = arith.addf %110, %66 : vector<6x8xf32>
    %c0_47 = arith.constant 0 : index
    %c0_48 = arith.constant 0 : index
    %112 = vector.load %arg15[%c0_47, %c0_48] : memref<8x4xf32, #tpu.memory_space<vmem>>, vector<8x4xf32>
    %cst_49 = arith.constant dense<0.000000e+00> : vector<6x4xf32>
    %113 = tpu.matmul %111, %112, %cst_49 {dimension_numbers = #tpu.dot_dimension_numbers<[1], [0], [0], [1], [0, 0, 1, 1], [], []>} : vector<6x8xf32>, vector<8x4xf32>, vector<6x4xf32> -> vector<6x4xf32>
    %c0_50 = arith.constant 0 : index
    %c0_51 = arith.constant 0 : index
    %114 = vector.load %arg16[%c0_50, %c0_51] : memref<6x4xf32, #tpu.memory_space<vmem>>, vector<6x4xf32>
    tpu.vector_store %arg16[%c0_50, %c0_51], %113 {strides = array<i32>} : memref<6x4xf32, #tpu.memory_space<vmem>>, vector<6x4xf32>,
    return
  }
}

</mosaic_0001>

<bundles_post_ra>
// kernel: forward.1
= control target key start
LH: loop header
LB: loop body
LE: loop exit
PB: predicated region body
PF: predicated region fallthrough
CT: control target
= control target key end

     0   :  { %s695_s0 = inlined_call_operand.vmem [shape: f32[2,4], index: 0, kind: input, shape index: {}]   ;;  %s696_s1 = inlined_call_operand.vmem [shape: f32[6,4], index: 1, kind: input, shape index: {}]   ;;  %s697_s2 = inlined_call_operand.vmem [shape: f32[2,8], index: 2, kind: input, shape index: {}]   ;;  %s698_s3 = inlined_call_operand.vmem [shape: f32[8,8], index: 3, kind: input, shape index: {}]   ;;  %s699_s4 = inlined_call_operand.hbm [shape: f32[1,8], index: 4, kind: input, shape index: {}]   ;;  %s700_s5 = inlined_call_operand.vmem [shape: f32[12,8], index: 5, kind: input, shape index: {}]   ;;  %s701_s6 = inlined_call_operand.vmem [shape: f32[4,8], index: 6, kind: input, shape index: {}]   ;;  %s702_s7 = inlined_call_operand.vmem [shape: f32[8,8], index: 7, kind: input, shape index: {}]   ;;  %s703_s8 = inlined_call_operand.vmem [shape: f32[8,8], index: 8, kind: input, shape index: {}]   ;;  %s704_s9 = inlined_call_operand.hbm [shape: f32[1,8], index: 9, kind: input, shape index: {}]   ;;  %s705_s10 = inlined_call_operand.vmem [shape: f32[1,8], index: 10, kind: input, shape index: {}]   ;;  %s706_s11 = inlined_call_operand.vmem [shape: f32[8,8], index: 11, kind: input, shape index: {}]   ;;  %s707_s12 = inlined_call_operand.hbm [shape: f32[8,8], index: 12, kind: input, shape index: {}]   ;;  %s708_s13 = inlined_call_operand.vmem [shape: f32[1,8], index: 13, kind: input, shape index: {}]   ;;  %s709_s14 = inlined_call_operand.vmem [shape: f32[1,8], index: 14, kind: input, shape index: {}]   ;;  %s710_s15 = inlined_call_operand.vmem [shape: f32[8,4], index: 15, kind: input, shape index: {}]   ;;  %s711_s16 = inlined_call_operand.vmem [shape: f32[6,4], index: 16, kind: output, shape index: {}]  }
   0x1   :  { %712 = sst [smem:[#allocation9_spill]] %s695_s0 }
   0x2   :  { %21 = vsyncpa [#allocation3], 0 }
   0x3   :  { %22 = vsyncpa [#allocation5], 0  ;;  %s55_s23 = sshll.u32 %s704_s9, 4  ;;  %s537_s24 = smov [#allocation4]   ;;  %s56_s23 = int_to_ptr.hbm [resolvable:$true] %s55_s23 }
   0x4   :  { %s57_s25 = sshll.u32 %s537_s24, 4  ;;  %s36_s27 = sshll.u32 %s699_s4, 4  ;;  %s58_s25 = int_to_ptr.vmem [resolvable:$true] %s57_s25  ;;  %s37_s27 = int_to_ptr.hbm [resolvable:$true] %s36_s27 }
   0x5   :  { %60 = dma.hbm_to_vmem [thread:$0]  %s56_s23, 16, %s58_s25, [#allocation5]  }
   0x6   :  { %s538_s28 = smov [#allocation2]   ;;  %s70_s17 = sshll.u32 %s707_s12, 4  ;;  %s71_s17 = int_to_ptr.hbm [resolvable:$true] %s70_s17 }
   0x7   :  { %s38_s29 = sshll.u32 %s538_s28, 4  ;;  %s539_s9 = smov [#allocation6]   ;;  %s39_s29 = int_to_ptr.vmem [resolvable:$true] %s38_s29 }
   0x8   :  { %41 = dma.hbm_to_vmem [thread:$0]  %s37_s27, 16, %s39_s29, [#allocation3]  }
   0x9   :  { %s72_s18 = sshll.u32 %s539_s9, 4  ;;  %s73_s18 = int_to_ptr.vmem [resolvable:$true] %s72_s18 }
   0xa   :  { %75 = dma.hbm_to_vmem [thread:$0]  %s71_s17, 128, %s73_s18, [#allocation5]  }
   0xb   :  { %533 = dma.done.wait [#allocation3], 16  }
   0xc   :  { %534 = vsyncadd [#allocation3], 4294967280 }
   0xd   :  { %535 = dma.done.wait [#allocation5], 144  }
   0xe   :  { %536 = vsyncadd [#allocation5], 4294967152  ;;  %vm104_vm0 = vcmask 64512   ;;  %v99_v0 = vld [vmem:[%s698_s3] sm:$0xff]  ;;  %vm140_vm1 = vcmask 1043456   ;;  %vm132_vm2 = vcmask 31744  }
   0xf   :  { %v98_v1 = vld [vmem:[%s697_s2] sm:$0x3]  ;;  %123 = vmatpush.msra.mxu0 %v99_v0  ;;  %v135_v5 = vld [vmem:[%s700_s5 + $0x8] sm:$0xf]  ;;  %s540_s2 = smov 4   ;;  %s713_s29 = sld [smem:[#allocation9_spill]] }
  0x10   :  { %439 = vmatmul.msk.f32.vlgmr.msra.gmra.mxu0 %vm104_vm0, %v98_v1  ;;  %v164_v2 = vld [vmem:[%s701_s6] sm:$0xf]  ;;  %440 = vmatpush.msk.msra.mxu1 %vm140_vm1, %v135_v5  ;;  %vm136_vm3 = vcmask 97280   ;;  %v304_v39 = vld [vmem:[#allocation6] sm:$0xff]  ;;  %vm298_vm7 = vcmask 1041408   ;;  %vm431_vm11 = vcmask 29696  }
  0x11   :  { %v96_v3 = vld [vmem:[%s696_s1] sm:$0x3f]  ;;  %442 = vmatpush.msk.msra.mxu2 %vm140_vm1, %v164_v2 }
  0x12   :  { %v97_v4 = vmul.f32 0.5, %v96_v3  ;;  %v453_v6 = vld [vmem:[#allocation2] ss:$0 sm:$0xff]  ;;  %v454_v49 = vld [vmem:[#allocation4] ss:$0 sm:$0xff] }
  0x13   :  { %v134_v9 = vld [vmem:[%s700_s5] sm:$0xff] }
  0x14   :  { %443 = vmatmul.msk.f32.vlgmr.msra.gmra.mxu2 %vm132_vm2, %v97_v4  ;;  %159 = vmatpush.msra.mxu1 %v134_v9  ;;  %v192_v10 = vld [vmem:[%s703_s8] sm:$0xff] }
  0x15   :  { %236 = vmatpush.msrb.mxu0 %v192_v10  ;;  %v94_v12 = vld [vmem:[%s713_s29] sm:$0x3] }
  0x16   :  { %v95_v13 = vmul.f32 0.5, %v94_v12  ;;  %v191_v16 = vld [vmem:[%s702_s7] sm:$0xff] }
  0x17   :  { %213 = vmatpush.msra.mxu3 %v191_v16  ;;  %v303_v36 = vld [vmem:[%s706_s11] sm:$0xff] }
  0x18   :  { %324 = vmatpush.msrb.mxu2 %v303_v36  ;;  %v455_v51 = vld [vmem:[%s705_s10] ss:$0 sm:$0xff] }
  0x19   :  { %347 = vmatpush.msrb.mxu3 %v304_v39 }
  0x8d   :  { %v125_v7 = vpop.f32.mrf.mxu0 }
  0x8e   :  { %v126_v8 = vadd.f32 %v453_v6, %v125_v7 }
  0x90   :  { %129 = vrot.lane.b32.xlu0 %v126_v8, %s540_s2 }
  0x97   :  { %v660_v11 = vpop.f32.mrf.mxu2 }
  0x98   :  { %445 = vmatmul.msk.f32.vlgmr.msrb.gmra.mxu0 %vm104_vm0, %v660_v11 }
 0x102   :  { %v130_v14 = vpop.permute.xlu0 %129 }
 0x103   :  { %v133_v15 = vsel %vm132_vm2, %v95_v13, %v130_v14 }
 0x104   :  { %441 = vmatmul.msk.f32.vlgmr.msra.gmra.mxu1 %vm136_vm3, %v133_v15 }
 0x115   :  { %v238_v18 = vpop.f32.mrf.mxu0 }
 0x116   :  { %v241_v19 = vmul.f32 %v238_v18, %v238_v18  ;;  %v255_v25 = vrot.slane %v238_v18, 2  ;;  %v258_v29 = vrot.slane %v238_v18, 4 }
 0x118   :  { %v243_v20 = vrot.slane %v241_v19, 2  ;;  %v246_v22 = vrot.slane %v241_v19, 4 }
 0x11a   :  { %v245_v21 = vadd.f32 %v243_v20, %v241_v19 }
 0x11c   :  { %v248_v23 = vadd.f32 %v246_v22, %v245_v21 }
 0x11e   :  { %v250_v27 = vmul.f32 0.57735026, %v248_v23 }
 0x181   :  { %v161_v17 = vpop.f32.mrf.mxu1 }
 0x182   :  { %444 = vmatmul.msk.f32.vlgmr.msra.gmra.mxu3 %vm104_vm0, %v161_v17 }
 0x205   :  { %v215_v24 = vpop.f32.mrf.mxu3 }
 0x206   :  { %v249_v26 = vmul.f32 %v215_v24, %v215_v24  ;;  %v252_v28 = vmul.f32 0.57735026, %v215_v24  ;;  %v407_v24 = vld [vmem:[%s710_s15] sm:$0xff] }
 0x207   :  { %426 = vmatpush.msrb.mxu1 %v407_v24 }
 0x208   :  { %v251_v30 = vadd.f32 %v250_v27, %v249_v26  ;;  %v253_v31 = vmul.f32 %v252_v28, %v238_v18  ;;  %v257_v32 = vmul.f32 %v255_v25, %v252_v28  ;;  %v260_v33 = vmul.f32 %v258_v29, %v252_v28 }
 0x20a   :  { %v261_v34 = vmul.f32 %v251_v30, %v251_v30  ;;  %v262_v35 = vmul.f32 %v253_v31, %v253_v31  ;;  %v264_v38 = vmul.f32 %v257_v32, %v257_v32  ;;  %v266_v41 = vmul.f32 %v260_v33, %v260_v33 }
 0x20b   :  { %v283_v53 = vmul.f32 %v454_v49, %v251_v30 }
 0x20c   :  { %v263_v37 = vadd.f32 %v262_v35, %v261_v34 }
 0x20e   :  { %v265_v40 = vadd.f32 %v264_v38, %v263_v37 }
 0x210   :  { %v267_v42 = vadd.f32 %v266_v41, %v265_v40 }
 0x212   :  { %v268_v43 = vmul.f32 0.25, %v267_v42 }
 0x214   :  { %v269_v44 = vadd.f32 1e-06, %v268_v43 }
 0x216   :  { %457 = vrsqrt.f32 %v269_v44  ;;  %vm276_vm5 = vweird.f32 %v269_v44 }
 0x21c   :  { %v458_v45 = vpop.eup %457 }
 0x21d   :  { %v271_v46 = vmul.f32 %v458_v45, %v269_v44  ;;  %vm277_vm4 = vweird.f32 %v458_v45 }
 0x21e   :  { %vm278_vm6 = vmor %vm276_vm5, %vm277_vm4 }
 0x21f   :  { %v272_v47 = vmul.f32 %v458_v45, %v271_v46 }
 0x221   :  { %v273_v48 = vmul.f32 0.5, %v272_v47 }
 0x223   :  { %v274_v50 = vsub.f32 1.5, %v273_v48 }
 0x225   :  { %v275_v52 = vmul.f32 %v458_v45, %v274_v50 }
 0x227   :  { %v279_v54 = vsel %vm278_vm6, %v458_v45, %v275_v52 }
 0x228   :  { %v284_v55 = vmul.f32 %v283_v53, %v279_v54  ;;  %v288_v56 = vmul.f32 %v455_v51, %v279_v54 }
 0x22a   :  { %v290_v57 = vmul.f32 %v288_v56, %v257_v32  ;;  %v291_v58 = vmul.f32 %v288_v56, %v260_v33  ;;  %v301_v59 = vadd.f32 %v284_v55, %v161_v17  ;;  %v289_v60 = vmul.f32 %v288_v56, %v253_v31  ;;  %v456_v33 = vld [vmem:[%s709_s14] ss:$0 sm:$0xff] }
 0x22c   :  { %v293_v61 = vrot.slane %v290_v57, 6  ;;  %v296_v62 = vrot.slane %v291_v58, 4  ;;  %446 = vmatmul.msk.f32.vlgmr.msrb.gmra.mxu2 %vm104_vm0, %v301_v59 }
 0x22e   :  { %v299_v63 = vsel %vm298_vm7, %v289_v60, %v293_v61 }
 0x22f   :  { %v300_v0 = vsel %vm140_vm1, %v299_v63, %v296_v62 }
 0x230   :  { %v302_v1 = vadd.f32 %v300_v0, %v660_v11 }
 0x232   :  { %447 = vmatmul.msk.f32.vlgmr.msrb.gmra.mxu3 %vm104_vm0, %v302_v1 }
 0x2af   :  { %v326_v5 = vpop.f32.mrf.mxu2 }
 0x2b0   :  { %v363_v8 = vmul.f32 0.57735026, %v326_v5  ;;  %v360_v12 = vmul.f32 %v326_v5, %v326_v5 }
 0x2b5   :  { %v349_v2 = vpop.f32.mrf.mxu3 }
 0x2b6   :  { %v352_v3 = vmul.f32 %v349_v2, %v349_v2  ;;  %v366_v10 = vrot.slane %v349_v2, 2  ;;  %v364_v14 = vmul.f32 %v363_v8, %v349_v2  ;;  %v369_v15 = vrot.slane %v349_v2, 4 }
 0x2b8   :  { %v354_v4 = vrot.slane %v352_v3, 2  ;;  %v357_v7 = vrot.slane %v352_v3, 4  ;;  %v368_v17 = vmul.f32 %v366_v10, %v363_v8  ;;  %v371_v18 = vmul.f32 %v369_v15, %v363_v8 }
 0x2b9   :  { %v373_v11 = vmul.f32 %v364_v14, %v364_v14 }
 0x2ba   :  { %v356_v6 = vadd.f32 %v354_v4, %v352_v3  ;;  %v375_v21 = vmul.f32 %v368_v17, %v368_v17  ;;  %v377_v23 = vmul.f32 %v371_v18, %v371_v18 }
 0x2bc   :  { %v359_v9 = vadd.f32 %v357_v7, %v356_v6 }
 0x2be   :  { %v361_v13 = vmul.f32 0.57735026, %v359_v9 }
 0x2c0   :  { %v362_v16 = vadd.f32 %v361_v13, %v360_v12 }
 0x2c2   :  { %v372_v19 = vmul.f32 %v362_v16, %v362_v16 }
 0x2c4   :  { %v374_v20 = vadd.f32 %v373_v11, %v372_v19 }
 0x2c6   :  { %v376_v22 = vadd.f32 %v375_v21, %v374_v20 }
 0x2c8   :  { %v378_v25 = vadd.f32 %v377_v23, %v376_v22 }
 0x2ca   :  { %v379_v26 = vmul.f32 0.25, %v378_v25 }
 0x2cc   :  { %v380_v27 = vadd.f32 1e-06, %v379_v26 }
 0x2ce   :  { %459 = vrsqrt.f32 %v380_v27  ;;  %vm387_vm9 = vweird.f32 %v380_v27 }
 0x2d4   :  { %v460_v28 = vpop.eup %459 }
 0x2d5   :  { %v382_v29 = vmul.f32 %v460_v28, %v380_v27  ;;  %vm388_vm8 = vweird.f32 %v460_v28 }
 0x2d6   :  { %vm389_vm10 = vmor %vm387_vm9, %vm388_vm8 }
 0x2d7   :  { %v383_v30 = vmul.f32 %v460_v28, %v382_v29 }
 0x2d9   :  { %v384_v31 = vmul.f32 0.5, %v383_v30 }
 0x2db   :  { %v385_v32 = vsub.f32 1.5, %v384_v31 }
 0x2dd   :  { %v386_v34 = vmul.f32 %v460_v28, %v385_v32 }
 0x2df   :  { %v390_v35 = vsel %vm389_vm10, %v460_v28, %v386_v34 }
 0x2e0   :  { %v394_v36 = vmul.f32 %v456_v33, %v390_v35 }
 0x2e2   :  { %v396_v37 = vmul.f32 %v394_v36, %v368_v17  ;;  %v397_v38 = vmul.f32 %v394_v36, %v371_v18  ;;  %v395_v39 = vmul.f32 %v394_v36, %v364_v14 }
 0x2e4   :  { %v399_v40 = vrot.slane %v396_v37, 6  ;;  %v402_v41 = vrot.slane %v397_v38, 4 }
 0x2e6   :  { %v404_v42 = vsel %vm298_vm7, %v395_v39, %v399_v40 }
 0x2e7   :  { %v405_v43 = vsel %vm140_vm1, %v404_v42, %v402_v41 }
 0x2e8   :  { %v406_v44 = vadd.f32 %v405_v43, %v302_v1 }
 0x2ea   :  { %448 = vmatmul.msk.f32.vlgmr.msrb.gmra.mxu1 %vm104_vm0, %v406_v44 }
 0x367   :  { %v428_v45 = vpop.f32.mrf.mxu1 }
 0x368   :  { %432 = vst.msk [vmem:[%s711_s16] sm:$0x3f] %vm431_vm11, %v428_v45 }
 0x369   :  { %437 = vsyncpa [#allocation3], 1 }
 0x36a   :  { %438 = vsyncpa [#allocation5], 1 }

</bundles_post_ra>
